<compile_context>
chip_gen: v5e
topology: v5e:2x2
jax: 0.10.0
libtpu: 0.0.40
codegen_flags: <defaults>
</compile_context>

<pallas_src>
import functools

import jax
import jax.numpy as jnp
from jax.experimental import pallas as pl
from jax.experimental.pallas import tpu as pltpu


_LANE = 128
_SUBLANE = 8
_MAX_TILE_ROWS = 1024   # 1024 x 128 x 4B = 512 KiB block -> 1 MiB double-buffered
_N_SPLITS = 2           # leading "parallel" axis -> both TensorCores on v7x


def _cdiv(a, b):
    return -(-a // b)


def _entropy_partial_kernel(x_ref, out_ref, *, eps, tile_r):
    """Accumulate per-split partial sums of x*log(x+eps) into an (8,128) vreg."""
    j = pl.program_id(1)

    @pl.when(j == 0)
    def _():
        out_ref[...] = jnp.zeros_like(out_ref)

    x = x_ref[...].astype(jnp.float32)          # (tile_r, 128)
    contrib = x * jnp.log(x + eps)              # VPU mul + EUP log, f32 math

    # (tile_r, 128) -> (tile_r//8, 8, 128): group whole sublane tiles and
    # reduce across them with pure VPU adds (no cross-lane XLU work per step).
    partial = contrib.reshape(tile_r // _SUBLANE, _SUBLANE, _LANE).sum(axis=0)

    # Output block (1, 8, 128) is resident across the "arbitrary" j axis
    # (same block index for all j) -> acts as the accumulator.
    out_ref[...] = out_ref[...] + partial[None, :, :]


def entropy_loss(x, eps=1e-12):
    """x: any-rank array (e.g. NCHW probabilities). Returns scalar f32 loss."""
    numel = x.size
    c = x.shape[1]
    divisor = numel / c  # number of elements in b after sum over dim=1

    # ---- derive lane-aligned 2D slab + tiling (full reduction, so the
    #      flattening order does not affect the result) ----
    rows = _cdiv(numel, _LANE)
    rows_per_split = _cdiv(rows, _N_SPLITS)
    tile_r = min(_MAX_TILE_ROWS,
                 max(_SUBLANE, _cdiv(rows_per_split, _SUBLANE) * _SUBLANE))
    tiles_per_split = _cdiv(rows_per_split, tile_r)
    padded_rows = _N_SPLITS * tiles_per_split * tile_r
    padded_numel = padded_rows * _LANE

    flat = jnp.ravel(x)
    if padded_numel != numel:
        # Exact: padded zeros contribute 0 * log(0 + eps) == 0 (log(eps) finite).
        flat = jnp.concatenate(
            [flat, jnp.zeros((padded_numel - numel,), dtype=flat.dtype)])
    x2d = flat.reshape(padded_rows, _LANE)

    grid = (_N_SPLITS, tiles_per_split)

    kernel = functools.partial(_entropy_partial_kernel, eps=eps, tile_r=tile_r)

    itemsize = jnp.dtype(x.dtype).itemsize
    cost = pl.CostEstimate(
        flops=3 * padded_numel,
        transcendentals=padded_numel,
        bytes_accessed=padded_numel * itemsize
        + _N_SPLITS * _SUBLANE * _LANE * 4,
    )

    partials = pl.pallas_call(
        kernel,
        out_shape=jax.ShapeDtypeStruct((_N_SPLITS, _SUBLANE, _LANE), jnp.float32),
        grid_spec=pltpu.PrefetchScalarGridSpec(
            num_scalar_prefetch=0,
            grid=grid,
            in_specs=[pl.BlockSpec(
                (tile_r, _LANE),
                lambda i, j: (i * tiles_per_split + j, 0))],
            out_specs=pl.BlockSpec(
                (1, _SUBLANE, _LANE), lambda i, j: (i, 0, 0)),
        ),
        compiler_params=pltpu.CompilerParams(
            dimension_semantics=("parallel", "arbitrary")),
        cost_estimate=cost,
    )(x2d)

    # One tiny final reduce + scale outside the hot loop.
    return -jnp.sum(partials) / jnp.float32(divisor)


def entropy_loss_ref(x, eps=1e-12):
    """Pure-JAX reference matching the PyTorch module exactly."""
    x = x.astype(jnp.float32)
    b = x * jnp.log(x + eps)
    b = -1.0 * b.sum(axis=1)
    return b.mean()


if __name__ == "__main__":
    key = jax.random.PRNGKey(0)
    # NCHW probability-like input: batch=2, channels=4, spatial=16x16.
    logits = jax.random.normal(key, (2, 4, 16, 16), dtype=jnp.float32)
    x = jax.nn.softmax(logits, axis=1)  # EntropyLoss expects probabilities

    out = entropy_loss(x)
    out = jax.block_until_ready(out)

    ref = entropy_loss_ref(x)
    assert jnp.allclose(out, ref, rtol=1e-5, atol=1e-6), (out, ref)
    print("KERNEL_OK")
</pallas_src>

<mosaic_0001>
module attributes {stable_mosaic.version = 11 : i64} {
  func.func @_entropy_partial_kernel(%arg0: i32, %arg1: i32, %arg2: memref<8x128xf32, #tpu.memory_space<vmem>>, %arg3: memref<1x8x128xf32, #tpu.memory_space<vmem>>) attributes {dimension_semantics = [#tpu.dimension_semantics<parallel>, #tpu.dimension_semantics<arbitrary>], iteration_bounds = array<i64: 2, 1>, scalar_prefetch = 0 : i64, scratch_operands = 0 : i64, tpu.core_type = #tpu.core_type<tc>, window_params = [{transform_indices = @transform_0, window_bounds = array<i64: 8, 128>}, {transform_indices = @transform_1, window_bounds = array<i64: 1, 8, 128>}]} {
    %c0_i32 = arith.constant 0 : i32
    %0 = arith.cmpi eq, %arg1, %c0_i32 : i32
    %1 = arith.extui %0 : i1 to i32
    %c0_i32_0 = arith.constant 0 : i32
    %2 = arith.cmpi ne, %1, %c0_i32_0 : i32
    scf.if %2 {
      %cst_9 = arith.constant 0.000000e+00 : f32
      %14 = vector.broadcast %cst_9 : f32 to vector<1x8x128xf32>
      %c0_10 = arith.constant 0 : index
      %c0_11 = arith.constant 0 : index
      %c0_12 = arith.constant 0 : index
      %15 = vector.load %arg3[%c0_10, %c0_11, %c0_12] : memref<1x8x128xf32, #tpu.memory_space<vmem>>, vector<1x8x128xf32>
      tpu.vector_store %arg3[%c0_10, %c0_11, %c0_12], %14 {strides = array<i32>} : memref<1x8x128xf32, #tpu.memory_space<vmem>>, vector<1x8x128xf32>,
    } else {
    }
    %c0 = arith.constant 0 : index
    %c0_1 = arith.constant 0 : index
    %3 = vector.load %arg2[%c0, %c0_1] : memref<8x128xf32, #tpu.memory_space<vmem>>, vector<8x128xf32>
    %cst = arith.constant 9.99999996E-13 : f32
    %4 = vector.broadcast %cst : f32 to vector<8x128xf32>
    %5 = arith.addf %3, %4 : vector<8x128xf32>
    %6 = math.log %5 : vector<8x128xf32>
    %7 = arith.mulf %3, %6 : vector<8x128xf32>
    %8 = vector.shape_cast %7 : vector<8x128xf32> to vector<1x8x128xf32>
    %cst_2 = arith.constant dense<0.000000e+00> : vector<8x128xf32>
    %9 = vector.multi_reduction <add>, %8, %cst_2 [0] : vector<1x8x128xf32> to vector<8x128xf32>
    %c0_3 = arith.constant 0 : index
    %c0_4 = arith.constant 0 : index
    %c0_5 = arith.constant 0 : index
    %10 = vector.load %arg3[%c0_3, %c0_4, %c0_5] : memref<1x8x128xf32, #tpu.memory_space<vmem>>, vector<1x8x128xf32>
    %11 = vector.shape_cast %9 : vector<8x128xf32> to vector<1x8x128xf32>
    %12 = arith.addf %10, %11 : vector<1x8x128xf32>
    %c0_6 = arith.constant 0 : index
    %c0_7 = arith.constant 0 : index
    %c0_8 = arith.constant 0 : index
    %13 = vector.load %arg3[%c0_6, %c0_7, %c0_8] : memref<1x8x128xf32, #tpu.memory_space<vmem>>, vector<1x8x128xf32>
    tpu.vector_store %arg3[%c0_6, %c0_7, %c0_8], %12 {strides = array<i32>} : memref<1x8x128xf32, #tpu.memory_space<vmem>>, vector<1x8x128xf32>,
    return
  }
  func.func @transform_0(%arg0: i32, %arg1: i32) -> (i32, i32) {
    %c1_i32 = arith.constant 1 : i32
    %0 = arith.muli %arg0, %c1_i32 : i32
    %1 = arith.addi %0, %arg1 : i32
    %c0_i32 = arith.constant 0 : i32
    %c0_i32_0 = arith.constant 0 : i32
    return %1, %c0_i32 : i32, i32
  }
  func.func @transform_1(%arg0: i32, %arg1: i32) -> (i32, i32, i32) {
    %c0_i32 = arith.constant 0 : i32
    %c0_i32_0 = arith.constant 0 : i32
    %c0_i32_1 = arith.constant 0 : i32
    return %arg0, %c0_i32, %c0_i32_0 : i32, i32, i32
  }
}

</mosaic_0001>

<bundles_post_ra>
// kernel: tpu_custom_call.1
= control target key start
LH: loop header
LB: loop body
LE: loop exit
PB: predicated region body
PF: predicated region fallthrough
CT: control target
= control target key end

     0   :  { %6 = vsyncpa [#allocation3], 0  ;;  %s581_s0 = inlined_call_operand.hbm [shape: f32[16,128], index: 0, kind: input, shape index: {}]   ;;  %s582_s1 = inlined_call_operand.hbm [shape: f32[2,8,128], index: 1, kind: output, shape index: {}]  }
   0x1   :  { %8 = vsyncpa [#allocation3 + $0x1], 0 }
   0x2   :  { %9 = vsyncpa [#allocation4], 0 }
   0x3   :  { %11 = vsyncpa [#allocation4 + $0x1], 0  ;;  %s461_s6 = smov 0   ;;  %s463_s7 = smov 0  }
   0x4   :  { %s465_s8 = smov 0   ;;  %s467_s9 = smov 0  }
   0x5   :  { %s469_s10 = smov 0   ;;  %s471_s11 = smov 0  }
   0x6 LB: > { %s259_s12 = sadd.s32 4294967295, %s449_s11   ;;  %s260_s13 = sadd.s32 4294967294, %s449_s11   ;;  %s449_s11 = sphi %s471_s11, %s17_s11   ;;  %s445_s10 = sphi %s469_s10, %s591_s10   ;;  %s441_s9 = sphi %s467_s9, %s590_s9   ;;  %s437_s8 = sphi %s465_s8, %s589_s8   ;;  %s433_s7 = sphi %s463_s7, %s588_s7   ;;  %s429_s6 = sphi %s461_s6, %s587_s6  }
   0x7   : > { %s29_s14 = sadd.s32 1, %s445_s10  ;;  %s38_s15 = sadd.s32 1, %s437_s8 }
   0x8   : > { %p31_p0 = scmp.ge.s32.totalorder %s29_s14, 2  ;;  %p45_p1 = scmp.ne.s32.totalorder %s437_s8, %s433_s7 }
   0x9   : > { %p46_p2 = scmp.eq.s32.totalorder %s449_s11, 0  ;;  %p51_p3 = scmp.ne.s32.totalorder %s433_s7, %s429_s6 }
   0xa   : > { %s593_s14 = smov (%p31_p0, %s29_s14), 0  ;;  %p52_p5 = scmp.eq.s32.totalorder %s259_s12, 0 }
   0xb   : > { %p502_p4 = por %p46_p2, %p45_p1  ;;  %s35_s17 = ssub.s32 %s445_s10, %s593_s14 }
   0xc   : > { %p75_p6 = scmp.eq.s32.totalorder %s259_s12, 1  ;;  %p36_p7 = scmp.eq.s32.totalorder %s35_s17, 0 }
   0xd   : > { %p508_p8 = por %p52_p5, %p51_p3  ;;  %p81_p10 = scmp.eq.s32.totalorder %s260_s13, 1 }
   0xe   : > { %p512_p9 = por %p75_p6, %p45_p1  ;;  %p262_p12 = scmp.ge.s32.totalorder %s449_s11, 2 }
   0xf   : > { %s517_s20 = scalar_select %p36_p7, %s437_s8, %s38_s15  }
  0x10   : > { %p519_p11 = por %p81_p10, %p51_p3  ;;  %p284_p13 = scmp.lt.s32.totalorder %s449_s11, 2 }
  0x11   : > { %s101_s22 = sand.u32 1, %s437_s8   ;;  %s264_s24 = sshll.u32 %s445_s10, 3 }
  0x12   : > { %s263_s23 = sshll.u32 %s101_s22, 3  ;;  %s110_s27 = scalar_lea.hbm %s581_s0, %s264_s24 }
  0x13   : > { %s105_s28 = scalar_lea.vmem [#allocation2], %s263_s23  ;;  %s112_s30 = sshll.u32 %s110_s27, 4  ;;  %s113_s30 = int_to_ptr.hbm [resolvable:$true] %s112_s30 }
  0x14   : > { %s114_s29 = sshll.u32 %s105_s28, 4  ;;  %p277_p0 = pnand %p284_p13, %p502_p4  ;;  %s115_s29 = int_to_ptr.vmem [resolvable:$true] %s114_s29 }
  0x15   : > { %p265_p1 = scmp.ge.s32.totalorder %s449_s11, 1  ;;  %p119_p2 = scmp.lt.s32.totalorder %s449_s11, 3 }
  0x16   : > { %s102_s2 = scalar_lea.sflag [#allocation3], %s101_s22 }
  0x17   : > { %279 = dma.hbm_to_vmem [thread:$0]  (!%p277_p0), %s113_s30, 128, %s115_s29, %s102_s2  }
  0x18   : > { %p120_p3 = pnand %p265_p1, %p119_p2 }
  0x19   : > { %s535_s3 = sand.u32 (!%p120_p3), 1, %s433_s7  }
  0x1a   : > { %123 = sbr.rel (%p120_p3) target bundleno = 49 (0x31), region = 24  ;;  %s266_s4 = sshll.u32 (!%p120_p3), %s535_s3, 3 }
  0x1b   : > { %s126_s5 = scalar_lea.sflag (!%p120_p3), [#allocation3], %s535_s3  ;;  %s129_s12 = scalar_lea.vmem (!%p120_p3), [#allocation2], %s266_s4 }
  0x1f   : > { %420 = dma.done.wait (%p508_p8), %s126_s5, 128  }
  0x20   : > { %422 = vsyncadd (%p508_p8), %s126_s5, 4294967168  ;;  %v155_v0 = vld [vmem:[%s129_s12] sm:$0xff]  ;;  %s269_s13 = sshll.u32 %s441_s9, 3  ;;  %s148_s22 = scalar_lea.vmem [#allocation5], %s266_s4 }
  0x21   : > { %v156_v1 = vadd.f32 1e-12, %v155_v0  ;;  %s175_s17 = scalar_lea.hbm %s582_s1, %s269_s13  ;;  %s177_s23 = sshll.u32 %s148_s22, 4  ;;  %s178_s23 = int_to_ptr.vmem [resolvable:$true] %s177_s23 }
  0x22   : > { %s179_s24 = sshll.u32 %s175_s17, 4  ;;  %s165_s18 = scalar_lea.sflag [#allocation4], %s535_s3  ;;  %s180_s24 = int_to_ptr.hbm [resolvable:$true] %s179_s24 }
  0x23   : > { %335 = vlog2.f32 %v156_v1  ;;  %s381_s25 = sshra.s32 %s180_s24, 4  ;;  %s387_s28 = scalar_lea.hbm %s582_s1, 16  ;;  %s382_s25 = int_to_ptr.hbm [resolvable:$true] %s381_s25 }
  0x24   : > { %s383_s26 = scalar_lea.hbm %s382_s25, 8  ;;  %p388_p7 = scmp.lt.s32.totalorder %s382_s25, %s582_s1 }
  0x25   : > { %p384_p4 = scmp.ne.s32.totalorder %s382_s25, %s383_s26  ;;  %p389_p8 = scmp.lt.s32.totalorder %s387_s28, %s383_s26 }
  0x27   : > { %p385_p5 = pnand %p384_p4, %p512_p9  ;;  %p390_p10 = por %p389_p8, %p388_p7 }
  0x29   : > { %v336_v2 = vpop.eup %335  ;;  %p386_p6 = pneg %p385_p5 }
  0x2a   : > { %v158_v3 = vmul.f32 0.6931472, %v336_v2 }
  0x2b   : > { %p391_p13 = pnand %p390_p10, %p386_p6 }
  0x2c   : > { %v159_v4 = vmul.f32 %v158_v3, %v155_v0 }
  0x2e   : > { %163 = vst [vmem:[%s148_s22] sm:$0xff] %v159_v4 }
  0x2f   : > { %394 = shalt.err (!%p391_p13)
}
  0x30   : > { %274 = dma.vmem_to_hbm [thread:$0]  (%p512_p9), %s178_s23, 128, %s180_s24, %s165_s18  }
  0x31 PF: > { %s191_s2 = sand.u32 1, %s429_s6   ;;  %p281_p0 = pnand %p262_p12, %p519_p11 }
  0x32   : > { %s192_s3 = scalar_lea.sflag [#allocation4], %s191_s2 }
  0x33   : > { %p282_p1 = pneg %p281_p0 }
  0x35   : > { %424 = dma.done.wait (%p282_p1), %s192_s3, 128  }
  0x36   : > { %426 = vsyncadd (%p282_p1), %s192_s3, 4294967168  ;;  %s17_s11 = sadd.s32 1, %s449_s11   ;;  %s587_s6 = smov %s433_s7 }
  0x37   : > { %p14_p2 = scmp.ge.s32.totalorder %s17_s11, 4   ;;  %s588_s7 = smov %s437_s8 }
  0x38   : > { %s589_s8 = smov %s517_s20  ;;  %s590_s9 = smov %s445_s10 }
  0x39   : > { %s591_s10 = smov %s593_s14  ;;  %16 = sbr.rel (!%p14_p2) target bundleno = 6 (0x6), region = 73 }
  0x3e   :  { %198 = vsyncpa [#allocation3], 1 }
  0x3f   :  { %200 = vsyncpa [#allocation3 + $0x1], 1 }
  0x40   :  { %201 = vsyncpa [#allocation4], 1 }
  0x41   :  { %203 = vsyncpa [#allocation4 + $0x1], 1 }

</bundles_post_ra>
